<compile_context>
chip_gen: v7x
topology: tpu7x:2x2x1
jax: 0.10.0
libtpu: 0.0.40
codegen_flags: <defaults>
</compile_context>

<pallas_src>
import functools

import jax
import jax.numpy as jnp
import numpy as np
from jax.experimental import pallas as pl
from jax.experimental.pallas import tpu as pltpu

KERNEL_SIZE = 2   # fixed by LocallyConnectedNet._calculate_dense_architecture
LANES = 128


def _round_up(n, m):
    return ((n + m - 1) // m) * m


# ---------------------------------------------------------------------------
# One-time packing: collapse the affine layer stack (init time, not per forward).
# ---------------------------------------------------------------------------
def build_affine_map(layer_weights, layer_biases, H0, W0):
    """Compose all LocalFCLayer2D ('shrink', 2x2, stride 1, C_in=C_out=1) layers
    into x_out = A @ x_in + c, with A: (Ho*Wo, H0*W0), c: (Ho*Wo,).
    Valid because the stack has no nonlinearity between layers. f64 accumulate."""
    A = np.eye(H0 * W0, dtype=np.float64)
    c = np.zeros(H0 * W0, dtype=np.float64)
    Hk, Wk = H0, W0
    for Wf, b in zip(layer_weights, layer_biases):
        W4 = np.asarray(Wf, dtype=np.float64)[0, 0]           # (Hk, Wk, 2, 2)
        Ho, Wo = Hk - 1, Wk - 1
        M = np.zeros((Ho * Wo, Hk * Wk), dtype=np.float64)
        for i in range(KERNEL_SIZE):
            for j in range(KERNEL_SIZE):
                # out[p, q] += x[p+1-i, q+1-j] * W[p+1-i, q+1-j, i, j]
                for p in range(Ho):
                    r = p + 1 - i
                    for q in range(Wo):
                        s = q + 1 - j
                        M[p * Wo + q, r * Wk + s] += W4[r, s, i, j]
        bk = (np.zeros(Ho * Wo, np.float64) if b is None
              else np.asarray(b, dtype=np.float64).reshape(-1))
        A = M @ A
        c = M @ c + bk
        Hk, Wk = Ho, Wo
    return A, c


def pack_affine_for_mxu(A, c, K_pad, N_pad):
    """(N, K) map + (N,) bias -> lane-dense f32 MXU operands:
    A_t (K_pad, N_pad) so that out = x @ A_t + c, and c (1, N_pad)."""
    N, K = A.shape
    A_t = np.zeros((K_pad, N_pad), np.float32)
    A_t[:K, :N] = A.T.astype(np.float32)
    c_p = np.zeros((1, N_pad), np.float32)
    c_p[0, :N] = c.astype(np.float32)
    return jnp.asarray(A_t), jnp.asarray(c_p)


def pack_learned_params(params, B_pad, K_pad):
    """(B, H0, W0) learnable maps -> (B_pad, K_pad) flattened, zero-padded f32."""
    B, H0, W0 = params.shape
    flat = params.reshape(B, H0 * W0).astype(jnp.float32)
    return jnp.pad(flat, ((0, B_pad - B), (0, K_pad - H0 * W0)))


# ---------------------------------------------------------------------------
# Kernel: the entire LocallyConnectedNet forward is one MXU GEMM + bias add.
# ---------------------------------------------------------------------------
def _lcnet_gemm_kernel(x_ref, a_ref, c_ref, o_ref):
    # x: (Bt, K_pad), a: (K_pad, N_pad), c: (1, N_pad) -> o: (Bt, N_pad)
    o_ref[...] = (
        jnp.dot(x_ref[...], a_ref[...], preferred_element_type=jnp.float32)
        + c_ref[...]
    )


def locally_connected_net_forward(params, a_t, c_p, n_out):
    """params: (B, H0, W0) learnable maps; a_t: (K_pad, N_pad); c_p: (1, N_pad)."""
    B = params.shape[0]
    K_pad, N_pad = a_t.shape

    # Batch tiling: big per-step blocks amortize the ~0.35 us/step grid cost,
    # but keep >=2 grid steps when the batch allows so a v7x megacore can shard
    # the "parallel" batch axis across both TensorCores.
    Bt = min(_round_up(B, 8), 512)
    if B >= 16 and _round_up(B, Bt) // Bt < 2:
        Bt = _round_up(pl.cdiv(B, 2), 8)
    B_pad = _round_up(B, Bt)
    num_steps = B_pad // Bt

    x = pack_learned_params(params, B_pad, K_pad)

    flops = 2 * B_pad * K_pad * N_pad
    bytes_accessed = 4 * (x.size + a_t.size + c_p.size + B_pad * N_pad)

    out = pl.pallas_call(
        _lcnet_gemm_kernel,
        out_shape=jax.ShapeDtypeStruct((B_pad, N_pad), jnp.float32),
        grid=(num_steps,),
        in_specs=[
            pl.BlockSpec((Bt, K_pad), lambda b: (b, 0)),      # per-step batch rows
            pl.BlockSpec((K_pad, N_pad), lambda b: (0, 0)),   # shared collapsed map
            pl.BlockSpec((1, N_pad), lambda b: (0, 0)),       # shared folded bias
        ],
        out_specs=pl.BlockSpec((Bt, N_pad), lambda b: (b, 0)),
        compiler_params=pltpu.CompilerParams(
            dimension_semantics=("parallel",),                # shard batch over v7x TCs
        ),
        cost_estimate=pl.CostEstimate(
            flops=flops, transcendentals=0, bytes_accessed=bytes_accessed),
    )(x, a_t, c_p)

    # torch: (1, 1, Ho, Wo).flatten() per instance (row-major == our column order)
    return out[:B, :n_out]


# ---------------------------------------------------------------------------
# Pure-JAX transcription of the PyTorch module, for verification.
# ---------------------------------------------------------------------------
def torch_equivalent_reference(params2d, layer_weights, layer_biases):
    x = params2d
    for Wf, b in zip(layer_weights, layer_biases):
        H, W = x.shape
        y = jnp.einsum('ij,ijrs->rsij', x, Wf[0, 0])      # (2, 2, H, W)
        out = jnp.zeros((H - 1, W - 1), jnp.float32)
        for i in range(KERNEL_SIZE):
            for j in range(KERNEL_SIZE):
                out = out + y[i, j, 1 - i:H - i, 1 - j:W - j]
        x = out + (b if b is not None else 0.0)
    return x.reshape(-1)


if __name__ == "__main__":
    # model_config analogue: {'bias': True, 'layers': 4, 'networkInitStructure': None}
    w, h = 8, 8               # action_space_shape
    layers = 4
    use_bias = True
    B = 16                    # batched independent parameter sets (throughput extension)

    # _calculate_dense_architecture(kernel_size=2, layers, stride=1, channels=1)
    H0 = w + layers * (KERNEL_SIZE - 1)   # 12
    W0 = h + layers * (KERNEL_SIZE - 1)   # 12
    Ho, Wo = H0 - layers, W0 - layers     # 8, 8
    K_pad = _round_up(H0 * W0, LANES)     # 256  (GEMM contracting dim, lane-dense)
    N_pad = _round_up(Ho * Wo, LANES)     # 128  (GEMM output dim, lane-dense)

    # Deterministic init (module shapes; random values instead of the module's
    # zeros / 0.25 constants so the computation is non-trivial).
    key = jax.random.PRNGKey(0)
    key, kp = jax.random.split(key)
    params = jax.random.normal(kp, (B, H0, W0), dtype=jnp.float32)

    layer_weights, layer_biases = [], []
    Hk, Wk = H0, W0
    for _ in range(layers):
        key, kw, kb = jax.random.split(key, 3)
        Wf = jax.random.normal(kw, (1, 1, Hk, Wk, KERNEL_SIZE, KERNEL_SIZE),
                               dtype=jnp.float32) * 0.25
        b = (jax.random.normal(kb, (Hk - 1, Wk - 1), dtype=jnp.float32) * 0.1
             if use_bias else None)
        layer_weights.append(Wf)
        layer_biases.append(b)
        Hk, Wk = Hk - 1, Wk - 1

    # One-time collapse + packing into kernel layout (hoisted out of the forward path).
    A, c = build_affine_map(layer_weights, layer_biases, H0, W0)
    a_t, c_p = pack_affine_for_mxu(A, c, K_pad, N_pad)

    fwd = jax.jit(functools.partial(locally_connected_net_forward, n_out=Ho * Wo))
    out = jax.block_until_ready(fwd(params, a_t, c_p))

    for bidx in range(B):
        ref = torch_equivalent_reference(params[bidx], layer_weights, layer_biases)
        np.testing.assert_allclose(np.asarray(out[bidx]), np.asarray(ref),
                                   rtol=1e-4, atol=1e-5)
    assert out.shape == (B, w * h)
    print("KERNEL_OK")
</pallas_src>

<mosaic_0001>
module attributes {stable_mosaic.version = 11 : i64} {
  func.func @_lcnet_gemm_kernel(%arg0: i32, %arg1: memref<8x256xf32, #tpu.memory_space<vmem>>, %arg2: memref<256x128xf32, #tpu.memory_space<vmem>>, %arg3: memref<1x128xf32, #tpu.memory_space<vmem>>, %arg4: memref<8x128xf32, #tpu.memory_space<vmem>>) attributes {dimension_semantics = [#tpu.dimension_semantics<parallel>], iteration_bounds = array<i64: 2>, scalar_prefetch = 0 : i64, scratch_operands = 0 : i64, tpu.core_type = #tpu.core_type<tc>, window_params = [{transform_indices = @transform_0, window_bounds = array<i64: 8, 256>}, {pipeline_mode = #tpu.pipeline_mode<synchronous>, transform_indices = @transform_1, window_bounds = array<i64: 256, 128>}, {pipeline_mode = #tpu.pipeline_mode<synchronous>, transform_indices = @transform_2, window_bounds = array<i64: 1, 128>}, {transform_indices = @transform_3, window_bounds = array<i64: 8, 128>}]} {
    %c0 = arith.constant 0 : index
    %c0_0 = arith.constant 0 : index
    %0 = vector.load %arg1[%c0, %c0_0] : memref<8x256xf32, #tpu.memory_space<vmem>>, vector<8x256xf32>
    %c0_1 = arith.constant 0 : index
    %c0_2 = arith.constant 0 : index
    %1 = vector.load %arg2[%c0_1, %c0_2] : memref<256x128xf32, #tpu.memory_space<vmem>>, vector<256x128xf32>
    %cst = arith.constant dense<0.000000e+00> : vector<8x128xf32>
    %2 = tpu.matmul %0, %1, %cst {dimension_numbers = #tpu.dot_dimension_numbers<[1], [0], [0], [1], [0, 0, 1, 1], [], []>} : vector<8x256xf32>, vector<256x128xf32>, vector<8x128xf32> -> vector<8x128xf32>
    %c0_3 = arith.constant 0 : index
    %c0_4 = arith.constant 0 : index
    %3 = vector.load %arg3[%c0_3, %c0_4] : memref<1x128xf32, #tpu.memory_space<vmem>>, vector<1x128xf32>
    %4 = vector.broadcast %3 : vector<1x128xf32> to vector<8x128xf32>
    %5 = arith.addf %2, %4 : vector<8x128xf32>
    %c0_5 = arith.constant 0 : index
    %c0_6 = arith.constant 0 : index
    %6 = vector.load %arg4[%c0_5, %c0_6] : memref<8x128xf32, #tpu.memory_space<vmem>>, vector<8x128xf32>
    tpu.vector_store %arg4[%c0_5, %c0_6], %5 {strides = array<i32>} : memref<8x128xf32, #tpu.memory_space<vmem>>, vector<8x128xf32>,
    return
  }
  func.func @transform_0(%arg0: i32) -> (i32, i32) {
    %c0_i32 = arith.constant 0 : i32
    %c0_i32_0 = arith.constant 0 : i32
    return %arg0, %c0_i32 : i32, i32
  }
  func.func @transform_1(%arg0: i32) -> (i32, i32) {
    %c0_i32 = arith.constant 0 : i32
    %c0_i32_0 = arith.constant 0 : i32
    %c0_i32_1 = arith.constant 0 : i32
    return %c0_i32, %c0_i32_0 : i32, i32
  }
  func.func @transform_2(%arg0: i32) -> (i32, i32) {
    %c0_i32 = arith.constant 0 : i32
    %c0_i32_0 = arith.constant 0 : i32
    %c0_i32_1 = arith.constant 0 : i32
    return %c0_i32, %c0_i32_0 : i32, i32
  }
  func.func @transform_3(%arg0: i32) -> (i32, i32) {
    %c0_i32 = arith.constant 0 : i32
    %c0_i32_0 = arith.constant 0 : i32
    return %arg0, %c0_i32 : i32, i32
  }
}

</mosaic_0001>

<bundles_post_ra>
// kernel: locally_connected_net_forward.1
= control target key start
LH: loop header
LB: loop body
LE: loop exit
PB: predicated region body
PF: predicated region fallthrough
CT: control target
= control target key end

     0   :  { %8 = vsyncpa [#allocation3], 0  ;;  %s761_s0 = inlined_call_operand.vmem [shape: f32[16,256], index: 0, kind: input, shape index: {}]   ;;  %s762_s1 = inlined_call_operand.vmem [shape: f32[256,128], index: 1, kind: input, shape index: {}]   ;;  %s763_s2 = inlined_call_operand.vmem [shape: f32[1,128], index: 2, kind: input, shape index: {}]   ;;  %s764_s3 = inlined_call_operand.hbm [shape: f32[16,128], index: 3, kind: output, shape index: {}]  }
   0x1   :  { %10 = vsyncpa [#allocation3 + $0x1], 0  ;;  %s558_s12 = smov 0   ;;  %s560_s13 = smov 0  }
   0x2   :  { %s562_s14 = smov 0   ;;  %s564_s15 = smov 0  }
   0x3 LB: > { %s579_s16 = sadd.s32 4294967295, %s535_s15   ;;  %s354_s17 = sadd.s32 4294967294, %s535_s15   ;;  %s535_s15 = sphi %s564_s15, %s770_s15   ;;  %s531_s14 = sphi %s562_s14, %s769_s14   ;;  %s527_s13 = sphi %s560_s13, %s768_s13   ;;  %s523_s12 = sphi %s558_s12, %s767_s12  }
   0x4   : > { %s583_s18 = sadd.s32 1, %s535_s15   ;;  %s91_s19 = sadd.s32 1, %s531_s14 }
   0x5   : > { %s88_s20 = ssub.s32 %s535_s15, %s583_s18  ;;  %p101_p0 = scmp.ne.s32.totalorder %s531_s14, %s527_s13 }
   0x6   : > { %p89_p1 = scmp.eq.s32.totalorder %s88_s20, 0  ;;  %p102_p2 = scmp.eq.s32.totalorder %s579_s16, 1 }
   0x7   : > { %p107_p3 = scmp.ne.s32.totalorder %s527_s13, %s523_s12  ;;  %p108_p4 = scmp.eq.s32.totalorder %s354_s17, 1 }
   0x8   : > { %s594_s21 = scalar_select %p89_p1, %s531_s14, %s91_s19  }
   0x9   : > { %p596_p5 = por %p102_p2, %p101_p0  ;;  %p600_p6 = por %p108_p4, %p107_p3 }
   0xa   : > { %p357_p7 = scmp.ge.s32.totalorder %s535_s15, 1  ;;  %p140_p8 = scmp.lt.s32.totalorder %s535_s15, 3 }
   0xc   : > { %p141_p9 = pnand %p357_p7, %p140_p8 }
   0xd   : > { %v187_v0 = vld [vmem:[%s762_s1 + $0x80] sm:$0xff] (!%p141_p9)  ;;  %v188_v1 = vld [vmem:[%s762_s1 + $0x88] sm:$0xff] (!%p141_p9)  ;;  %p164_p10 = scmp.lt.s32.totalorder (!%p141_p9), %s579_s16, 1  ;;  %v189_v5 = vld [vmem:[%s762_s1 + $0x90] sm:$0xff] (!%p141_p9)  ;;  %s161_s20 = sand.u32 (!%p141_p9), 1, %s527_s13  }
   0xe   : > { %144 = sbr.rel (%p141_p9) target bundleno = 279 (0x117), region = 32  ;;  %v171_v2 = vld [vmem:[%s762_s1] sm:$0xff] (!%p141_p9)  ;;  %v402_v3 = vpack.c.bf16 (!%p141_p9), %v188_v1, %v187_v0  ;;  %v172_v4 = vld [vmem:[%s762_s1 + $0x8] sm:$0xff] (!%p141_p9)  ;;  %v190_v6 = vld [vmem:[%s762_s1 + $0x98] sm:$0xff] (!%p141_p9)  ;;  %s363_s28 = sshll.u32 (!%p141_p9), %s579_s16, 7 }
   0xf   : > { %v404_v7 = vpack.c.bf16 (!%p141_p9), %v172_v4, %v171_v2  ;;  %v406_v8 = vpack.c.bf16 (!%p141_p9), %v190_v6, %v189_v5  ;;  %v173_v9 = vld [vmem:[%s762_s1 + $0x10] sm:$0xff] (!%p141_p9)  ;;  %v174_v10 = vld [vmem:[%s762_s1 + $0x18] sm:$0xff] (!%p141_p9)  ;;  %v191_v11 = vld [vmem:[%s762_s1 + $0xa0] sm:$0xff] (!%p141_p9)  ;;  %s719_s5 = scalar_lea.hbm (!%p141_p9), %s764_s3, %s363_s28 }
  0x10   : > { %403 = vmatprep.subr.bf16.mxu0 (!%p141_p9), %v402_v3  ;;  %v192_v12 = vld [vmem:[%s762_s1 + $0xa8] sm:$0xff] (!%p141_p9)  ;;  %v408_v13 = vpack.c.bf16 (!%p141_p9), %v174_v10, %v173_v9  ;;  %v175_v15 = vld [vmem:[%s762_s1 + $0x20] sm:$0xff] (!%p141_p9)  ;;  %v193_v17 = vld [vmem:[%s762_s1 + $0xb0] sm:$0xff] (!%p141_p9) }
  0x11   : > { %405 = vmatpush3.bf16.msra.mxu0 (!%p141_p9), %v404_v7  ;;  %v410_v14 = vpack.c.bf16 (!%p141_p9), %v192_v12, %v191_v11  ;;  %v176_v16 = vld [vmem:[%s762_s1 + $0x28] sm:$0xff] (!%p141_p9)  ;;  %v194_v18 = vld [vmem:[%s762_s1 + $0xb8] sm:$0xff] (!%p141_p9)  ;;  %v177_v21 = vld [vmem:[%s762_s1 + $0x30] sm:$0xff] (!%p141_p9) }
  0x12   : > { %407 = vmatprep.subr.bf16.mxu0 (!%p141_p9), %v406_v8  ;;  %v412_v19 = vpack.c.bf16 (!%p141_p9), %v176_v16, %v175_v15  ;;  %v414_v20 = vpack.c.bf16 (!%p141_p9), %v194_v18, %v193_v17  ;;  %v178_v22 = vld [vmem:[%s762_s1 + $0x38] sm:$0xff] (!%p141_p9)  ;;  %v195_v23 = vld [vmem:[%s762_s1 + $0xc0] sm:$0xff] (!%p141_p9)  ;;  %v196_v24 = vld [vmem:[%s762_s1 + $0xc8] sm:$0xff] (!%p141_p9) }
  0x13   : > { %v416_v26 = vpack.c.bf16 (!%p141_p9), %v178_v22, %v177_v21  ;;  %v418_v27 = vpack.c.bf16 (!%p141_p9), %v196_v24, %v195_v23  ;;  %v179_v28 = vld [vmem:[%s762_s1 + $0x40] sm:$0xff] (!%p141_p9)  ;;  %v180_v29 = vld [vmem:[%s762_s1 + $0x48] sm:$0xff] (!%p141_p9)  ;;  %v197_v30 = vld [vmem:[%s762_s1 + $0xd0] sm:$0xff] (!%p141_p9) }
  0x14   : > { %v198_v31 = vld [vmem:[%s762_s1 + $0xd8] sm:$0xff] (!%p141_p9)  ;;  %v420_v32 = vpack.c.bf16 (!%p141_p9), %v180_v29, %v179_v28  ;;  %v181_v34 = vld [vmem:[%s762_s1 + $0x50] sm:$0xff] (!%p141_p9)  ;;  %v199_v36 = vld [vmem:[%s762_s1 + $0xe0] sm:$0xff] (!%p141_p9) }
  0x15   : > { %s165_s24 = scalar_select %p164_p10, %s579_s16, 1  ;;  %409 = vmatpush3.bf16.msra.mxu0 %v408_v13  ;;  %v422_v33 = vpack.c.bf16 %v198_v31, %v197_v30  ;;  %v182_v35 = vld [vmem:[%s762_s1 + $0x58] sm:$0xff]  ;;  %v200_v37 = vld [vmem:[%s762_s1 + $0xe8] sm:$0xff]  ;;  %v183_v40 = vld [vmem:[%s762_s1 + $0x60] sm:$0xff] }
  0x16   : > { %411 = vmatprep.subr.bf16.mxu0 %v410_v14  ;;  %v424_v38 = vpack.c.bf16 %v182_v35, %v181_v34  ;;  %v426_v39 = vpack.c.bf16 %v200_v37, %v199_v36  ;;  %v184_v41 = vld [vmem:[%s762_s1 + $0x68] sm:$0xff]  ;;  %v201_v42 = vld [vmem:[%s762_s1 + $0xf0] sm:$0xff]  ;;  %v202_v43 = vld [vmem:[%s762_s1 + $0xf8] sm:$0xff]  ;;  %s537_s16 = smov [#allocation2]  }
  0x17   : > { %s366_s27 = sshll.u32 %s165_s24, 4  ;;  %v428_v44 = vpack.c.bf16 %v184_v41, %v183_v40  ;;  %v430_v45 = vpack.c.bf16 %v202_v43, %v201_v42  ;;  %v185_v46 = vld [vmem:[%s762_s1 + $0x70] sm:$0xff]  ;;  %v186_v47 = vld [vmem:[%s762_s1 + $0x78] sm:$0xff]  ;;  %s358_s24 = sshll.u32 %s161_s20, 3  ;;  %v361_v51 = vld [vmem:[%s763_s2] ss:$0 sm:$0xff] }
  0x18   : > { %s653_s11 = scalar_lea.vmem %s761_s0, %s366_s27  ;;  %v432_v48 = vpack.c.bf16 %v186_v47, %v185_v46  ;;  %s163_s27 = scalar_lea.vmem [#allocation2], %s358_s24 }
  0x19   : > { %v170_v25 = vld [vmem:[%s653_s11 + $0x8] sm:$0xff]  ;;  %413 = vmatpush3.bf16.msra.mxu0 %v412_v19  ;;  %v169_v49 = vld [vmem:[%s653_s11] sm:$0xff]  ;;  %s295_s29 = sshll.u32 %s163_s27, 4  ;;  %s282_s11 = scalar_lea.sflag [#allocation3], %s161_s20  ;;  %s721_s29 = int_to_ptr.vmem [resolvable:$true] %s295_s29 }
  0x1a   : > { %274 = vmatprep.mubr.f32.mxu0 %v170_v25  ;;  %415 = vmatprep.subr.bf16.mxu0 %v414_v20  ;;  %s473_s6 = scalar_lea.vmem %s721_s29, 128  ;;  %s477_s7 = sshll.u32 %s537_s16, 4  ;;  %s478_s7 = int_to_ptr.vmem [resolvable:$false] %s477_s7 }
  0x1b   : > { %p474_p11 = scmp.ne.s32.totalorder %s721_s29, %s473_s6  ;;  %s479_s8 = scalar_lea.vmem %s478_s7, 256 }
  0x1c   : > { %p480_p0 = scmp.lt.s32.totalorder %s721_s29, %s478_s7  ;;  %p481_p1 = scmp.lt.s32.totalorder %s479_s8, %s473_s6 }
  0x1d   : > { %417 = vmatpush3.bf16.msra.mxu0 %v416_v26  ;;  %p475_p12 = pnand %p474_p11, %p596_p5 }
  0x1e   : > { %419 = vmatprep.subr.bf16.mxu0 %v418_v27  ;;  %p482_p2 = por %p481_p1, %p480_p0 }
  0x1f   : > { %p476_p13 = pneg %p475_p12 }
  0x21   : > { %421 = vmatpush3.bf16.msra.mxu0 %v420_v32  ;;  %p483_p3 = pnand %p482_p2, %p476_p13 }
  0x22   : > { %423 = vmatprep.subr.bf16.mxu0 %v422_v33 }
  0x25   : > { %425 = vmatpush3.bf16.msra.mxu0 %v424_v38 }
  0x26   : > { %427 = vmatprep.subr.bf16.mxu0 %v426_v39 }
  0x29   : > { %429 = vmatpush3.bf16.msra.mxu0 %v428_v44 }
  0x2a   : > { %431 = vmatprep.subr.bf16.mxu0 %v430_v45 }
  0x2d   : > { %433 = vmatpush3.bf16.msra.mxu0 %v432_v48 }
  0x30   : > { %275 = vmatmul.mubr.f32.vlgmr.msra.gmra.mrb[0].mxu0 %v169_v49 }
 0x103   : > { %v399_v50 = vpop.f32.mrb[0].mxu0 }
 0x104   : > { %v400_v52 = vpop.f32.mrb[1].mxu0 }
 0x105   : > { %v401_v53 = vadd.f32 %v400_v52, %v399_v50 }
 0x107   : > { %v277_v54 = vadd.f32 %v401_v53, %v361_v51 }
 0x109   : > { %280 = vst [vmem:[%s163_s27] sm:$0xff] %v277_v54 }
 0x10a   : > { %486 = shalt.err (!%p483_p3)
}
 0x10b   : > { %s487_s9 = scalar_lea.hbm %s719_s5, 128  ;;  %s491_s19 = scalar_lea.hbm %s764_s3, 256 }
 0x10c   : > { %p488_p4 = scmp.ne.s32.totalorder %s719_s5, %s487_s9  ;;  %p492_p9 = scmp.lt.u32.totalorder %s719_s5, %s764_s3 }
 0x10d   : > { %p493_p10 = scmp.lt.u32.totalorder %s491_s19, %s487_s9  ;;  %p495_p12 = scmp.lt.u32.totalorder %s487_s9, %s719_s5 }
 0x10e   : > { %p489_p7 = pnand %p488_p4, %p596_p5 }
 0x10f   : > { %p494_p11 = por %p493_p10, %p492_p9 }
 0x110   : > { %p490_p8 = pneg %p489_p7 }
 0x111   : > { %p496_p13 = por %p495_p12, %p494_p11 }
 0x113   : > { %p497_p0 = pnand %p496_p13, %p490_p8 }
 0x115   : > { %500 = shalt.err (!%p497_p0)
}
 0x116   : > { %434 = dma.vmem_to_hbm [thread:$0]  (%p596_p5), %s721_s29, 128, %s719_s5, %s282_s11  }
 0x117 PF: > { %p440_p1 = scmp.ge.s32.totalorder %s535_s15, 2  ;;  %s307_s25 = sand.u32 1, %s523_s12  }
 0x118   : > { %s308_s26 = scalar_lea.sflag [#allocation3], %s307_s25 }
 0x119   : > { %p437_p2 = pnand %p440_p1, %p600_p6 }
 0x11b   : > { %518 = dma.done.wait (!%p437_p2), %s308_s26, 128  }
 0x11c   : > { %520 = vsyncadd (!%p437_p2), %s308_s26, 4294967168  ;;  %p13_p3 = scmp.ge.s32.totalorder %s583_s18, 4   ;;  %s767_s12 = smov %s527_s13 }
 0x11d   : > { %s768_s13 = smov %s531_s14  ;;  %s769_s14 = smov %s594_s21 }
 0x11e   : > { %s770_s15 = smov %s583_s18  ;;  %15 = sbr.rel (!%p13_p3) target bundleno = 3 (0x3), region = 67 }
 0x125   :  { %313 = vsyncpa [#allocation3], 1 }
 0x126   :  { %315 = vsyncpa [#allocation3 + $0x1], 1 }

</bundles_post_ra>
